<compile_context>
chip_gen: v7x
topology: tpu7x:2x2x1
jax: 0.10.0
libtpu: 0.0.40
codegen_flags: <defaults>
</compile_context>

<pallas_src>
import functools

import numpy as np
import jax
import jax.numpy as jnp
from jax import lax
from jax.experimental import pallas as pl
from jax.experimental.pallas import tpu as pltpu


# ----------------------------------------------------------------------------
# Config (mirrors the fields the PyTorch module reads in forward())
# ----------------------------------------------------------------------------
CONFIG = dict(
    n_inputs=8,
    n_outputs=4,
    architecture=[32, 32],
    activations=["relu", "tanh"],
    dropouts=[0.0, 0.0],          # p == 0.0 -> no Dropout module is inserted
    output_activation="linear",
    ensemble_size=4,
)
BATCH = 4
LANE = 128
# TODO(synk): dropouts > 0.0 (MC dropout) not implemented; config uses 0.0 so
# the forward pass matches the PyTorch module exactly.
# TODO(synk): in-kernel Gaussian noise via pltpu.prng_* would remove one input
# DMA; kept as an explicit input for determinism / testability.


def _round_up(v, m):
    return ((v + m - 1) // m) * m


def _apply_activation(name, x):
    name = name.lower()
    if name == "relu":
        return jnp.maximum(x, 0.0)
    if name == "elu":
        return jnp.where(x > 0, x, jnp.exp(x) - 1.0)
    if name == "leaky_relu":
        return jnp.where(x > 0, x, 0.2 * x)
    if name == "tanh":
        return jnp.tanh(x)
    if name == "sigmoid":
        return jax.nn.sigmoid(x)
    if name == "linear":
        return x
    # softmax would normalize across the fused ensemble lanes -> rejected in
    # prepare_params.  # TODO(synk): per-member softmax for the fused layout.
    raise ValueError(f"unsupported activation for fused kernel: {name}")


# ----------------------------------------------------------------------------
# Pallas kernel (single invocation, no grid)
# ----------------------------------------------------------------------------
def _ensemble_kernel(x_ref, slab_ref, noise_ref, out_ref, *,
                     layer_specs, activations, output_activation,
                     rt_off, n_out, batch, inv_n, inv_nm1):
    """layer_specs[j] = (w_row_offset, w_rows_to_read, b_row_offset)."""
    n_layers = len(layer_specs)

    # ---- fused forward pass: all K members in one dense MXU matmul chain ---
    h = x_ref[...]                                           # (B_pad, n_in)
    for j, (w_off, w_rows, b_off) in enumerate(layer_specs):
        w = slab_ref[w_off:w_off + w_rows, :]                # static row slice
        b = slab_ref[b_off:b_off + 1, :]                     # (1, 128)
        h = jnp.dot(h, w, preferred_element_type=jnp.float32) + b
        act = activations[j] if j < n_layers - 1 else output_activation
        h = _apply_activation(act, h)                        # (B_pad, 128)

    # ---- statistics over the K*B valid predictions -------------------------
    # RT[o, k*n_out + o] = 1, zeros elsewhere (incl. padded lanes >= K*n_out).
    rt = slab_ref[rt_off:rt_off + n_out, :]                  # (n_out, 128)

    row_ids = lax.broadcasted_iota(jnp.int32, h.shape, 0)
    row_valid = row_ids < batch                              # mask padded rows

    dn = (((1,), (1,)), ((), ()))                            # contract lane dim

    # Pass 1: mean (unbiased two-pass; padded lanes excluded by RT's zeros).
    h_m = jnp.where(row_valid, h, 0.0)
    m1 = lax.dot_general(h_m, rt, dn,
                         preferred_element_type=jnp.float32)  # (B_pad, n_out)
    mean = jnp.sum(m1, axis=0, keepdims=True) * inv_n         # (1, n_out)

    # Pass 2: unbiased variance (ddof=1, matching torch.std).
    mean_full = jnp.dot(mean, rt,
                        preferred_element_type=jnp.float32)   # (1, 128)
    d = h - mean_full
    d2 = jnp.where(row_valid, d * d, 0.0)
    m2 = lax.dot_general(d2, rt, dn,
                         preferred_element_type=jnp.float32)  # (B_pad, n_out)
    var = jnp.sum(m2, axis=0, keepdims=True) * inv_nm1
    sigma = jnp.sqrt(jnp.maximum(var, 0.0))                   # (1, n_out)

    out_ref[...] = mean + noise_ref[...] * sigma              # (B_pad, n_out)


# ----------------------------------------------------------------------------
# One-time parameter preparation (host-side numpy; NOT on the forward path)
# ----------------------------------------------------------------------------
def prepare_params(weights, biases, config):
    """Fuse the K ensemble members and pack everything into one f32 slab.

    weights[j]: (K, fan_in_j, fan_out_j);  biases[j]: (K, 1, fan_out_j).
    Layer 0 weights are concatenated along fan_out (shared input x); later
    layers become block-diagonal so all K members run as one dense matmul.
    Returns (param_slab (rows, 128) jnp.float32, layout dict of static ints).
    """
    K = config["ensemble_size"]
    n_out = config["n_outputs"]

    acts = [a.lower() for a in config["activations"]]
    acts.append(config["output_activation"].lower())
    if "softmax" in acts:
        raise NotImplementedError(
            "softmax mixes features across fused ensemble lanes")
    if any(p > 0.0 for p in config["dropouts"]):
        raise NotImplementedError("MC dropout (dropouts > 0) not implemented")

    blocks = []
    layer_specs = []
    row = 0
    for j, (w, b) in enumerate(zip(weights, biases)):
        w = np.asarray(w, np.float32)
        b = np.asarray(b, np.float32)
        _, fi, fo = w.shape
        fused_fo = K * fo
        if fused_fo > LANE:
            raise NotImplementedError(
                "fused fan_out > 128 lanes; add lane tiling")
        if j == 0:
            fused_fi = fi
            wf = np.concatenate([w[k] for k in range(K)], axis=1)
            w_store_rows = _round_up(fused_fi, 8)
            w_read_rows = fused_fi                 # x is (B_pad, n_in)
        else:
            fused_fi = K * fi
            if fused_fi > LANE:
                raise NotImplementedError(
                    "fused fan_in > 128 lanes; add lane tiling")
            wf = np.zeros((fused_fi, fused_fo), np.float32)
            for k in range(K):
                wf[k * fi:(k + 1) * fi, k * fo:(k + 1) * fo] = w[k]
            w_store_rows = LANE                    # h is (B_pad, 128)
            w_read_rows = LANE
        w_pad = np.zeros((w_store_rows, LANE), np.float32)
        w_pad[:fused_fi, :fused_fo] = wf

        bf = np.concatenate([b[k] for k in range(K)], axis=1)  # (1, fused_fo)
        b_pad = np.zeros((8, LANE), np.float32)
        b_pad[0, :fused_fo] = bf[0]

        w_off = row
        row += w_store_rows
        b_off = row
        row += 8
        blocks += [w_pad, b_pad]
        layer_specs.append((w_off, w_read_rows, b_off))

    # Statistics reduction matrix RT: RT[o, k*n_out + o] = 1.
    rt = np.zeros((8, LANE), np.float32)
    for k in range(K):
        for o in range(n_out):
            rt[o, k * n_out + o] = 1.0
    rt_off = row
    row += 8
    blocks.append(rt)

    slab = jnp.asarray(np.concatenate(blocks, axis=0))        # (rows, 128)
    layout = dict(layer_specs=tuple(layer_specs), rt_off=rt_off,
                  total_rows=row)
    return slab, layout


# ----------------------------------------------------------------------------
# Forward factory: closes over static config/layout, jitted, single DMA slab
# ----------------------------------------------------------------------------
def make_forward(config, layout):
    K = config["ensemble_size"]
    n_out = config["n_outputs"]
    activations = tuple(config["activations"])
    output_activation = config["output_activation"]
    layer_specs = layout["layer_specs"]
    rt_off = layout["rt_off"]

    @jax.jit
    def forward(x, param_slab, noise):
        B, n_in = x.shape
        B_pad = max(8, _round_up(B, 8))
        x_p = jnp.zeros((B_pad, n_in), jnp.float32).at[:B].set(x)
        noise_p = jnp.zeros((B_pad, n_out), jnp.float32).at[:B].set(noise)

        n = K * B
        kernel = functools.partial(
            _ensemble_kernel,
            layer_specs=layer_specs,
            activations=activations,
            output_activation=output_activation,
            rt_off=rt_off,
            n_out=n_out,
            batch=B,
            inv_n=1.0 / n,
            inv_nm1=1.0 / (n - 1),
        )

        out_pad = pl.pallas_call(
            kernel,
            out_shape=jax.ShapeDtypeStruct((B_pad, n_out), jnp.float32),
            in_specs=[pl.BlockSpec(memory_space=pltpu.MemorySpace.VMEM)] * 3,
            out_specs=pl.BlockSpec(memory_space=pltpu.MemorySpace.VMEM),
        )(x_p, param_slab, noise_p)
        return out_pad[:B]

    return forward


# ----------------------------------------------------------------------------
# Deterministic parameter init (PyTorch Linear-style uniform ±1/sqrt(fan_in))
# ----------------------------------------------------------------------------
def init_params(key, config):
    K = config["ensemble_size"]
    dims = ([config["n_inputs"]] + list(config["architecture"])
            + [config["n_outputs"]])
    weights, biases = [], []
    for j in range(len(dims) - 1):
        fan_in, fan_out = dims[j], dims[j + 1]
        key, kw, kb = jax.random.split(key, 3)
        bound = 1.0 / float(np.sqrt(fan_in))
        weights.append(jax.random.uniform(
            kw, (K, fan_in, fan_out), jnp.float32, -bound, bound))
        biases.append(jax.random.uniform(
            kb, (K, 1, fan_out), jnp.float32, -bound, bound))
    return weights, biases


# ----------------------------------------------------------------------------
# Pure-JAX reference for sanity checking
# ----------------------------------------------------------------------------
def reference_forward(x, weights, biases, noise, config):
    K = config["ensemble_size"]
    acts = config["activations"]
    preds = []
    for k in range(K):
        h = x
        for j in range(len(weights)):
            h = h @ weights[j][k] + biases[j][k]
            if j < len(weights) - 1:
                h = _apply_activation(acts[j], h)
            else:
                h = _apply_activation(config["output_activation"], h)
        preds.append(h)
    predictions = jnp.concatenate(preds, axis=0)          # (K*B, n_out)
    mean = jnp.mean(predictions, axis=0)                  # (n_out,)
    sigma = jnp.std(predictions, axis=0, ddof=1)          # unbiased, like torch
    return mean + noise * sigma


if __name__ == "__main__":
    key = jax.random.PRNGKey(0)
    key, kx, kn, kp = jax.random.split(key, 4)

    x = jax.random.normal(kx, (BATCH, CONFIG["n_inputs"]), jnp.float32)
    noise = jax.random.normal(kn, (BATCH, CONFIG["n_outputs"]), jnp.float32)
    weights, biases = init_params(kp, CONFIG)

    # One-time prep (out of the forward path).
    param_slab, layout = prepare_params(weights, biases, CONFIG)
    forward = make_forward(CONFIG, layout)

    out = forward(x, param_slab, noise)
    out = jax.block_until_ready(out)

    ref = reference_forward(x, weights, biases, noise, CONFIG)
    assert out.shape == (BATCH, CONFIG["n_outputs"])
    assert jnp.allclose(out, ref, atol=1e-4, rtol=1e-5), (out, ref)

    print("KERNEL_OK")
</pallas_src>

<mosaic_0001>
module attributes {stable_mosaic.version = 11 : i64} {
  func.func @_ensemble_kernel(%arg0: memref<8x8xf32, #tpu.memory_space<vmem>>, %arg1: memref<296x128xf32, #tpu.memory_space<vmem>>, %arg2: memref<8x4xf32, #tpu.memory_space<vmem>>, %arg3: memref<8x4xf32, #tpu.memory_space<vmem>>) attributes {dimension_semantics = [], scalar_prefetch = 0 : i64, scratch_operands = 0 : i64, tpu.core_type = #tpu.core_type<tc>} {
    %c0 = arith.constant 0 : index
    %c0_0 = arith.constant 0 : index
    %0 = vector.load %arg0[%c0, %c0_0] : memref<8x8xf32, #tpu.memory_space<vmem>>, vector<8x8xf32>
    %c0_1 = arith.constant 0 : index
    %c0_2 = arith.constant 0 : index
    %1 = vector.load %arg1[%c0_1, %c0_2] : memref<296x128xf32, #tpu.memory_space<vmem>>, vector<8x128xf32>
    %c8 = arith.constant 8 : index
    %c0_3 = arith.constant 0 : index
    %2 = vector.load %arg1[%c8, %c0_3] : memref<296x128xf32, #tpu.memory_space<vmem>>, vector<1x128xf32>
    %cst = arith.constant dense<0.000000e+00> : vector<8x128xf32>
    %3 = tpu.matmul %0, %1, %cst {dimension_numbers = #tpu.dot_dimension_numbers<[1], [0], [0], [1], [0, 0, 1, 1], [], []>} : vector<8x8xf32>, vector<8x128xf32>, vector<8x128xf32> -> vector<8x128xf32>
    %4 = vector.broadcast %2 : vector<1x128xf32> to vector<8x128xf32>
    %5 = arith.addf %3, %4 : vector<8x128xf32>
    %cst_4 = arith.constant 0.000000e+00 : f32
    %6 = vector.broadcast %cst_4 : f32 to vector<8x128xf32>
    %7 = arith.maximumf %5, %6 : vector<8x128xf32>
    %c16 = arith.constant 16 : index
    %c0_5 = arith.constant 0 : index
    %8 = vector.load %arg1[%c16, %c0_5] : memref<296x128xf32, #tpu.memory_space<vmem>>, vector<128x128xf32>
    %c144 = arith.constant 144 : index
    %c0_6 = arith.constant 0 : index
    %9 = vector.load %arg1[%c144, %c0_6] : memref<296x128xf32, #tpu.memory_space<vmem>>, vector<1x128xf32>
    %cst_7 = arith.constant dense<0.000000e+00> : vector<8x128xf32>
    %10 = tpu.matmul %7, %8, %cst_7 {dimension_numbers = #tpu.dot_dimension_numbers<[1], [0], [0], [1], [0, 0, 1, 1], [], []>} : vector<8x128xf32>, vector<128x128xf32>, vector<8x128xf32> -> vector<8x128xf32>
    %11 = vector.broadcast %9 : vector<1x128xf32> to vector<8x128xf32>
    %12 = arith.addf %10, %11 : vector<8x128xf32>
    %13 = math.tanh %12 : vector<8x128xf32>
    %c152 = arith.constant 152 : index
    %c0_8 = arith.constant 0 : index
    %14 = vector.load %arg1[%c152, %c0_8] : memref<296x128xf32, #tpu.memory_space<vmem>>, vector<128x128xf32>
    %c280 = arith.constant 280 : index
    %c0_9 = arith.constant 0 : index
    %15 = vector.load %arg1[%c280, %c0_9] : memref<296x128xf32, #tpu.memory_space<vmem>>, vector<1x128xf32>
    %cst_10 = arith.constant dense<0.000000e+00> : vector<8x128xf32>
    %16 = tpu.matmul %13, %14, %cst_10 {dimension_numbers = #tpu.dot_dimension_numbers<[1], [0], [0], [1], [0, 0, 1, 1], [], []>} : vector<8x128xf32>, vector<128x128xf32>, vector<8x128xf32> -> vector<8x128xf32>
    %17 = vector.broadcast %15 : vector<1x128xf32> to vector<8x128xf32>
    %18 = arith.addf %16, %17 : vector<8x128xf32>
    %c288 = arith.constant 288 : index
    %c0_11 = arith.constant 0 : index
    %19 = vector.load %arg1[%c288, %c0_11] : memref<296x128xf32, #tpu.memory_space<vmem>>, vector<4x128xf32>
    %20 = tpu.iota {dimensions = array<i32: 0>} : vector<8x128xi32>
    %c4_i32 = arith.constant 4 : i32
    %21 = vector.broadcast %c4_i32 : i32 to vector<8x128xi32>
    %22 = arith.cmpi slt, %20, %21 : vector<8x128xi32>
    %cst_12 = arith.constant 0.000000e+00 : f32
    %23 = vector.broadcast %cst_12 : f32 to vector<8x128xf32>
    %24 = arith.select %22, %18, %23 : vector<8x128xi1>, vector<8x128xf32>
    %cst_13 = arith.constant dense<0.000000e+00> : vector<8x4xf32>
    %25 = tpu.matmul %24, %19, %cst_13 {dimension_numbers = #tpu.dot_dimension_numbers<[1], [1], [0], [0], [0, 0, 1, 0], [], []>} : vector<8x128xf32>, vector<4x128xf32>, vector<8x4xf32> -> vector<8x4xf32>
    %cst_14 = arith.constant dense<0.000000e+00> : vector<4xf32>
    %26 = vector.multi_reduction <add>, %25, %cst_14 [0] : vector<8x4xf32> to vector<4xf32>
    %27 = vector.shape_cast %26 : vector<4xf32> to vector<1x4xf32>
    %cst_15 = arith.constant 6.250000e-02 : f32
    %28 = vector.broadcast %cst_15 : f32 to vector<1x4xf32>
    %29 = arith.mulf %27, %28 : vector<1x4xf32>
    %cst_16 = arith.constant dense<0.000000e+00> : vector<1x128xf32>
    %30 = tpu.matmul %29, %19, %cst_16 {dimension_numbers = #tpu.dot_dimension_numbers<[1], [0], [0], [1], [0, 0, 1, 1], [], []>} : vector<1x4xf32>, vector<4x128xf32>, vector<1x128xf32> -> vector<1x128xf32>
    %31 = vector.broadcast %30 : vector<1x128xf32> to vector<8x128xf32>
    %32 = arith.subf %18, %31 : vector<8x128xf32>
    %33 = arith.mulf %32, %32 : vector<8x128xf32>
    %cst_17 = arith.constant 0.000000e+00 : f32
    %34 = vector.broadcast %cst_17 : f32 to vector<8x128xf32>
    %35 = arith.select %22, %33, %34 : vector<8x128xi1>, vector<8x128xf32>
    %cst_18 = arith.constant dense<0.000000e+00> : vector<8x4xf32>
    %36 = tpu.matmul %35, %19, %cst_18 {dimension_numbers = #tpu.dot_dimension_numbers<[1], [1], [0], [0], [0, 0, 1, 0], [], []>} : vector<8x128xf32>, vector<4x128xf32>, vector<8x4xf32> -> vector<8x4xf32>
    %cst_19 = arith.constant dense<0.000000e+00> : vector<4xf32>
    %37 = vector.multi_reduction <add>, %36, %cst_19 [0] : vector<8x4xf32> to vector<4xf32>
    %38 = vector.shape_cast %37 : vector<4xf32> to vector<1x4xf32>
    %cst_20 = arith.constant 0.0666666701 : f32
    %39 = vector.broadcast %cst_20 : f32 to vector<1x4xf32>
    %40 = arith.mulf %38, %39 : vector<1x4xf32>
    %cst_21 = arith.constant 0.000000e+00 : f32
    %41 = vector.broadcast %cst_21 : f32 to vector<1x4xf32>
    %42 = arith.maximumf %40, %41 : vector<1x4xf32>
    %43 = math.sqrt %42 : vector<1x4xf32>
    %c0_22 = arith.constant 0 : index
    %c0_23 = arith.constant 0 : index
    %44 = vector.load %arg2[%c0_22, %c0_23] : memref<8x4xf32, #tpu.memory_space<vmem>>, vector<8x4xf32>
    %45 = vector.broadcast %43 : vector<1x4xf32> to vector<8x4xf32>
    %46 = arith.mulf %44, %45 : vector<8x4xf32>
    %47 = vector.broadcast %29 : vector<1x4xf32> to vector<8x4xf32>
    %48 = arith.addf %47, %46 : vector<8x4xf32>
    %c0_24 = arith.constant 0 : index
    %c0_25 = arith.constant 0 : index
    %49 = vector.load %arg3[%c0_24, %c0_25] : memref<8x4xf32, #tpu.memory_space<vmem>>, vector<8x4xf32>
    tpu.vector_store %arg3[%c0_24, %c0_25], %48 {strides = array<i32>} : memref<8x4xf32, #tpu.memory_space<vmem>>, vector<8x4xf32>,
    return
  }
}

</mosaic_0001>

<bundles_post_ra>
// kernel: forward.1
= control target key start
LH: loop header
LB: loop body
LE: loop exit
PB: predicated region body
PF: predicated region fallthrough
CT: control target
= control target key end

     0   :  { %8 = vsyncpa [#allocation3], 0  ;;  %s778_s12 = smov [#allocation2]   ;;  %s863_s0 = inlined_call_operand.vmem [shape: f32[8,8], index: 0, kind: input, shape index: {}]   ;;  %s864_s1 = inlined_call_operand.hbm [shape: f32[296,128], index: 1, kind: input, shape index: {}]   ;;  %s865_s2 = inlined_call_operand.vmem [shape: f32[8,4], index: 2, kind: input, shape index: {}]   ;;  %s866_s3 = inlined_call_operand.vmem [shape: f32[8,4], index: 3, kind: output, shape index: {}]  }
   0x1   :  { %s16_s13 = sshll.u32 %s778_s12, 4  ;;  %s754_s16 = scalar_lea.hbm %s864_s1, 4736  ;;  %s17_s13 = int_to_ptr.vmem [resolvable:$true] %s16_s13 }
   0x2   :  { %p755_p0 = scmp.ne.s32.totalorder %s864_s1, %s754_s16  ;;  %p758_p1 = scmp.lt.u32.totalorder %s754_s16, %s864_s1 }
   0x4   :  { %p760_p2 = pnand %p758_p1, %p755_p0 }
   0x6   :  { %763 = shalt.err (!%p760_p2)
}
   0x7   :  { %s764_s21 = scalar_lea.vmem %s17_s13, 4736  ;;  %p769_p4 = scmp.lt.s32.totalorder %s17_s13, %s17_s13 }
   0x8   :  { %p765_p3 = scmp.ne.s32.totalorder %s17_s13, %s764_s21  ;;  %p770_p5 = scmp.lt.s32.totalorder %s764_s21, %s764_s21 }
   0xa   :  { %p771_p6 = por %p770_p5, %p769_p4 }
   0xc   :  { %p772_p7 = pnand %p771_p6, %p765_p3 }
   0xe   :  { %775 = shalt.err (!%p772_p7)
}
   0xf   :  { %s779_s22 = smov 128   ;;  %s780_s23 = smov 8  }
  0x10   :  { %22 = dma.hbm_to_vmem [thread:$0]  %s864_s1, 4736, %s17_s13, [#allocation3], %s779_s22, %s779_s22, %s780_s23  }
  0x11   :  { %776 = dma.done.wait [#allocation3], 4736  }
  0x12   :  { %777 = vsyncadd [#allocation3], 4294962560  ;;  %v781_v0 = vmov 0.0   ;;  %vm782_vm0 = vmmov 0   ;;  %v783_v1 = vmov 0.0|0.0   ;;  %vm35_vm1 = vcmask 64512  }
  0x13   :  { %606 = vmatprep.subr.mxu0 %v781_v0  ;;  %608 = vmatprep.mubr.msk.f32.mxu0 %vm782_vm0, %v781_v0  ;;  %v29_v2 = vld [vmem:[#allocation2] sm:$0xff]  ;;  %v110_v4 = vld [vmem:[#allocation2 + $0x10] sm:$0xff]  ;;  %v111_v5 = vld [vmem:[#allocation2 + $0x18] sm:$0xff]  ;;  %v294_v63 = vlaneseq  ;;  %vm380_vm3 = vcmask 1043456   ;;  %vm368_vm4 = vcmask 31744  }
  0x14   :  { %696 = vmatprep.subr.bf16.mxu1 %v783_v1  ;;  %643 = vmatprep.mubr.msk.f32.mxu1 %vm782_vm0, %v781_v0  ;;  %v28_v3 = vld [vmem:[%s863_s0] sm:$0xff]  ;;  %v113_v7 = vld [vmem:[#allocation2 + $0x28] sm:$0xff]  ;;  %v697_v8 = vpack.c.bf16 %v111_v5, %v110_v4  ;;  %v114_v10 = vld [vmem:[#allocation2 + $0x30] sm:$0xff] }
  0x15   :  { %607 = vmatpush3.msra.mxu0 %v29_v2  ;;  %v112_v6 = vld [vmem:[#allocation2 + $0x20] sm:$0xff]  ;;  %v115_v11 = vld [vmem:[#allocation2 + $0x38] sm:$0xff]  ;;  %v117_v14 = vld [vmem:[#allocation2 + $0x48] sm:$0xff]  ;;  %v295_v2 = vshrl.u32 %v294_v63, 7 }
  0x16   :  { %609 = vmatmul.mubr.msk.f32.vlgmr.msra.gmra.mrb[0].mxu0 %vm35_vm1, %v28_v3  ;;  %720 = vmatprep.subr.bf16.mxu0 %v783_v1  ;;  %v700_v9 = vpack.c.bf16 %v113_v7, %v112_v6  ;;  %v703_v12 = vpack.c.bf16 %v115_v11, %v114_v10  ;;  %v116_v13 = vld [vmem:[#allocation2 + $0x40] sm:$0xff]  ;;  %v118_v16 = vld [vmem:[#allocation2 + $0x50] sm:$0xff]  ;;  %v119_v17 = vld [vmem:[#allocation2 + $0x58] sm:$0xff] }
  0x17   :  { %678 = vmatprep.mubr.msk.f32.mxu0 %vm782_vm0, %v781_v0  ;;  %698 = vmatpush3.bf16.msra.mxu1 %v697_v8  ;;  %v706_v15 = vpack.c.bf16 %v117_v14, %v116_v13  ;;  %v709_v18 = vpack.c.bf16 %v119_v17, %v118_v16  ;;  %v120_v19 = vld [vmem:[#allocation2 + $0x60] sm:$0xff]  ;;  %v121_v20 = vld [vmem:[#allocation2 + $0x68] sm:$0xff]  ;;  %v122_v22 = vld [vmem:[#allocation2 + $0x70] sm:$0xff]  ;;  %vm296_vm2 = vcmp.lt.s32.totalorder %v295_v2, 4  ;;  %v456_v16 = vsub.s32 0, %v295_v2 }
  0x18   :  { %699 = vmatprep.subr.bf16.mxu1 %v783_v1  ;;  %v712_v21 = vpack.c.bf16 %v121_v20, %v120_v19  ;;  %v123_v23 = vld [vmem:[#allocation2 + $0x78] sm:$0xff]  ;;  %v124_v25 = vld [vmem:[#allocation2 + $0x80] sm:$0xff]  ;;  %v125_v26 = vld [vmem:[#allocation2 + $0x88] sm:$0xff] }
  0x19   :  { %v715_v24 = vpack.c.bf16 %v123_v23, %v122_v22  ;;  %v718_v27 = vpack.c.bf16 %v125_v26, %v124_v25  ;;  %v202_v28 = vld [vmem:[#allocation2 + $0x98] sm:$0xff]  ;;  %v203_v29 = vld [vmem:[#allocation2 + $0xa0] sm:$0xff]  ;;  %v204_v30 = vld [vmem:[#allocation2 + $0xa8] sm:$0xff] }
  0x1a   :  { %v721_v31 = vpack.c.bf16 %v203_v29, %v202_v28  ;;  %v205_v32 = vld [vmem:[#allocation2 + $0xb0] sm:$0xff]  ;;  %v206_v34 = vld [vmem:[#allocation2 + $0xb8] sm:$0xff]  ;;  %v207_v35 = vld [vmem:[#allocation2 + $0xc0] sm:$0xff] }
  0x1b   :  { %701 = vmatpush3.bf16.msra.mxu1 %v700_v9  ;;  %v724_v33 = vpack.c.bf16 %v205_v32, %v204_v30  ;;  %v727_v36 = vpack.c.bf16 %v207_v35, %v206_v34  ;;  %v208_v37 = vld [vmem:[#allocation2 + $0xc8] sm:$0xff]  ;;  %v209_v38 = vld [vmem:[#allocation2 + $0xd0] sm:$0xff]  ;;  %v210_v40 = vld [vmem:[#allocation2 + $0xd8] sm:$0xff] }
  0x1c   :  { %702 = vmatprep.subr.bf16.mxu1 %v783_v1  ;;  %722 = vmatpush3.bf16.msra.mxu0 %v721_v31  ;;  %v730_v39 = vpack.c.bf16 %v209_v38, %v208_v37  ;;  %v211_v41 = vld [vmem:[#allocation2 + $0xe0] sm:$0xff]  ;;  %v556_v43 = vld [vmem:[#allocation2 + $0x8] ss:$0 sm:$0xff]  ;;  %v213_v49 = vld [vmem:[#allocation2 + $0xf0] sm:$0xff] }
  0x1d   :  { %723 = vmatprep.subr.bf16.mxu0 %v783_v1  ;;  %v733_v42 = vpack.c.bf16 %v211_v41, %v210_v40  ;;  %v212_v48 = vld [vmem:[#allocation2 + $0xe8] sm:$0xff]  ;;  %v214_v51 = vld [vmem:[#allocation2 + $0xf8] sm:$0xff]  ;;  %v215_v52 = vld [vmem:[#allocation2 + $0x100] sm:$0xff] }
  0x1e   :  { %v736_v50 = vpack.c.bf16 %v213_v49, %v212_v48  ;;  %v739_v53 = vpack.c.bf16 %v215_v52, %v214_v51  ;;  %v216_v54 = vld [vmem:[#allocation2 + $0x108] sm:$0xff]  ;;  %v217_v55 = vld [vmem:[#allocation2 + $0x110] sm:$0xff]  ;;  %v293_v57 = vld [vmem:[#allocation2 + $0x120] sm:$0xf] }
  0x1f   :  { %704 = vmatpush3.bf16.msra.mxu1 %v703_v12  ;;  %v742_v56 = vpack.c.bf16 %v217_v55, %v216_v54  ;;  %v558_v58 = vld [vmem:[#allocation2 + $0x90] ss:$0 sm:$0xff]  ;;  %v547_v35 = vld [vmem:[%s865_s2] sm:$0xff] }
  0x20   :  { %705 = vmatprep.subr.bf16.mxu1 %v783_v1  ;;  %725 = vmatpush3.bf16.msra.mxu0 %v724_v33 }
  0x21   :  { %726 = vmatprep.subr.bf16.mxu0 %v783_v1 }
  0x23   :  { %707 = vmatpush3.bf16.msra.mxu1 %v706_v15 }
  0x24   :  { %708 = vmatprep.subr.bf16.mxu1 %v783_v1  ;;  %728 = vmatpush3.bf16.msra.mxu0 %v727_v36 }
  0x25   :  { %729 = vmatprep.subr.bf16.mxu0 %v783_v1 }
  0x27   :  { %710 = vmatpush3.bf16.msra.mxu1 %v709_v18 }
  0x28   :  { %711 = vmatprep.subr.bf16.mxu1 %v783_v1  ;;  %731 = vmatpush3.bf16.msra.mxu0 %v730_v39 }
  0x29   :  { %732 = vmatprep.subr.bf16.mxu0 %v783_v1 }
  0x2b   :  { %713 = vmatpush3.bf16.msra.mxu1 %v712_v21 }
  0x2c   :  { %714 = vmatprep.subr.bf16.mxu1 %v783_v1  ;;  %734 = vmatpush3.bf16.msra.mxu0 %v733_v42 }
  0x2d   :  { %735 = vmatprep.subr.bf16.mxu0 %v783_v1 }
  0x2f   :  { %716 = vmatpush3.bf16.msra.mxu1 %v715_v24 }
  0x30   :  { %717 = vmatprep.subr.bf16.mxu1 %v783_v1  ;;  %737 = vmatpush3.bf16.msra.mxu0 %v736_v50 }
  0x31   :  { %738 = vmatprep.subr.bf16.mxu0 %v783_v1 }
  0x33   :  { %719 = vmatpush3.bf16.msra.mxu1 %v718_v27 }
  0x34   :  { %681 = vmatprep.subr.mxu1 %v781_v0  ;;  %740 = vmatpush3.bf16.msra.mxu0 %v739_v53 }
  0x35   :  { %741 = vmatprep.subr.bf16.mxu0 %v783_v1  ;;  %v559_v1 = vld [vmem:[#allocation2 + $0x118] ss:$0 sm:$0xff] }
  0x38   :  { %743 = vmatpush3.bf16.msra.mxu0 %v742_v56 }
  0x39   :  { %686 = vmatprep.subr.mxu0 %v781_v0 }
  0xe9   :  { %v105_v44 = vpop.f32.mrb[0].mxu0 }
  0xea   :  { %v106_v45 = vadd.f32 %v556_v43, %v105_v44  ;;  %v610_v46 = vpop.f32.mrb[1].mxu0 }
  0xec   :  { %v109_v47 = vmax.f32 %v106_v45, 0.0 }
  0xee   :  { %644 = vmatmul.mubr.f32.vlgmr.msra.gmra.mrb[0].mxu1 %v109_v47 }
  0xef   :  { %683 = vmatprep.mubr.msk.f32.mxu1 %vm782_vm0, %v781_v0  ;;  %682 = vmatpush3.xpose.msra.mxu1 %v293_v57 }
  0xf0   :  { %691 = vmatprep.subr.mxu1 %v781_v0 }
 0x1c1   :  { %v197_v59 = vpop.f32.mrb[0].mxu1 }
 0x1c2   :  { %v198_v60 = vadd.f32 %v558_v58, %v197_v59  ;;  %v645_v61 = vpop.f32.mrb[1].mxu1 }
 0x1c4   :  { %750 = vtanh.f32 %v198_v60 }
 0x1ce   :  { %v751_v62 = vpop.eup %750 }
 0x1cf   :  { %679 = vmatmul.mubr.f32.vlgmr.msra.gmra.mrb[2].mxu0 %v751_v62 }
 0x1d0   :  { %688 = vmatprep.mubr.msk.f32.mxu0 %vm782_vm0, %v781_v0  ;;  %687 = vmatpush3.msk.msra.mxu0 %vm380_vm3, %v293_v57 }
 0x2a2   :  { %v289_v3 = vpop.f32.mrb[2].mxu0 }
 0x2a3   :  { %v290_v4 = vadd.f32 %v559_v1, %v289_v3  ;;  %v680_v5 = vpop.f32.mrb[3].mxu0 }
 0x2a5   :  { %684 = vmatmul.mubr.msk.f32.vlgmr.msra.gmra.mrb[2].mxu1 %vm296_vm2, %v290_v4 }
 0x2a6   :  { %692 = vmatpush3.xpose.msra.mxu1 %v293_v57  ;;  %693 = vmatprep.mubr.msk.f32.mxu1 %vm782_vm0, %v781_v0 }
 0x378   :  { %v364_v6 = vpop.f32.mrb[2].mxu1 }
 0x379   :  { %v369_v7 = vsel %vm368_vm4, %v364_v6, 0.0  ;;  %v685_v8 = vpop.f32.mrb[3].mxu1 }
 0x37a   :  { %v370_v9 = vrot.slane %v369_v7, 4 }
 0x37c   :  { %v371_v10 = vadd.f32 %v370_v9, %v369_v7 }
 0x37e   :  { %v372_v11 = vrot.slane %v371_v10, 2 }
 0x380   :  { %v373_v12 = vadd.f32 %v372_v11, %v371_v10 }
 0x382   :  { %v374_v13 = vrot.slane %v373_v12, 1 }
 0x384   :  { %v375_v14 = vadd.f32 %v374_v13, %v373_v12 }
 0x386   :  { %v376_v15 = vmul.f32 0.0625, %v375_v14 }
 0x388   :  { %689 = vmatmul.mubr.msk.f32.vlgmr.msra.gmra.mrb[4].mxu0 %vm368_vm4, %v376_v15 }
 0x45b   :  { %v450_v17 = vpop.f32.mrb[4].mxu0 }
 0x45c   :  { %v457_v18 = vrot.slane %v450_v17, %v456_v16  ;;  %v690_v0 = vpop.f32.mrb[5].mxu0 }
 0x45e   :  { %v458_v19 = vsub.f32 %v290_v4, %v457_v18 }
 0x460   :  { %v459_v20 = vmul.f32 %v458_v19, %v458_v19 }
 0x462   :  { %694 = vmatmul.mubr.msk.f32.vlgmr.msra.gmra.mrb[4].mxu1 %vm296_vm2, %v459_v20 }
 0x535   :  { %v527_v21 = vpop.f32.mrb[4].mxu1 }
 0x536   :  { %v531_v22 = vsel %vm368_vm4, %v527_v21, 0.0  ;;  %v695_v23 = vpop.f32.mrb[5].mxu1 }
 0x537   :  { %v532_v24 = vrot.slane %v531_v22, 4 }
 0x539   :  { %v533_v25 = vadd.f32 %v532_v24, %v531_v22 }
 0x53b   :  { %v534_v26 = vrot.slane %v533_v25, 2 }
 0x53d   :  { %v535_v27 = vadd.f32 %v534_v26, %v533_v25 }
 0x53f   :  { %v536_v28 = vrot.slane %v535_v27, 1 }
 0x541   :  { %v537_v29 = vadd.f32 %v536_v28, %v535_v27 }
 0x543   :  { %v538_v30 = vmul.f32 0.06666667, %v537_v29 }
 0x545   :  { %v539_v31 = vmax.f32 %v538_v30, 0.0 }
 0x547   :  { %752 = vrsqrt.f32 %v539_v31  ;;  %vm542_vm5 = vcmp.eq.f32.partialorder %v539_v31, inf  ;;  %v545_v34 = vand.u32 2147483648, %v539_v31  ;;  %vm544_vm6 = vcmp.eq.f32.partialorder %v539_v31, 0.0 }
 0x551   :  { %v753_v32 = vpop.eup %752 }
 0x552   :  { %v541_v33 = vmul.f32 %v753_v32, %v539_v31 }
 0x554   :  { %v543_v36 = vsel %vm542_vm5, %v539_v31, %v541_v33 }
 0x555   :  { %v546_v37 = vsel %vm544_vm6, %v545_v34, %v543_v36 }
 0x556   :  { %v548_v38 = vmul.f32 %v547_v35, %v546_v37 }
 0x558   :  { %v549_v39 = vadd.f32 %v548_v38, %v376_v15 }
 0x55a   :  { %550 = vst.msk [vmem:[%s866_s3] sm:$0xff] %vm368_vm4, %v549_v39 }
 0x55b   :  { %555 = vsyncpa [#allocation3], 1 }

</bundles_post_ra>
